<compile_context>
chip_gen: v7x
topology: tpu7x:2x2x1
jax: 0.10.0
libtpu: 0.0.40
codegen_flags: <defaults>
</compile_context>

<pallas_src>
import jax
import jax.numpy as jnp
from jax.experimental import pallas as pl
from jax.experimental.pallas import tpu as pltpu


def _round_up(x, m):
    return (x + m - 1) // m * m


# ------------- pass 1: conv as im2col matmul + streaming BN partial statistics -------------
def _conv_stats_kernel(x_ref, w_ref, y_ref, stats_ref):
    # x_ref: (TILE_M, K) bf16   w_ref: (K, C_pad) bf16
    acc = jnp.dot(x_ref[...], w_ref[...], preferred_element_type=jnp.float32)
    y_ref[...] = acc                                          # lane-dense f32 conv tile
    s = jnp.sum(acc, axis=0, keepdims=True)                   # (1, C_pad) per-tile sum
    ss = jnp.sum(acc * acc, axis=0, keepdims=True)            # (1, C_pad) per-tile sum-of-squares
    stats_ref[...] = jnp.concatenate([s, ss], axis=0).reshape(stats_ref.shape)


# ------------------------ pass 2: fused BN scale/shift + ReLU ------------------------
def _bn_relu_kernel(y_ref, scale_ref, shift_ref, o_ref):
    o_ref[...] = jnp.maximum(y_ref[...] * scale_ref[...] + shift_ref[...],
                             0.0).astype(o_ref.dtype)


def vgg_conv_forward(x_nchw, w_oihw, b, gamma, beta, *, tile_m=512, eps=1e-5):
    """NCHW in / NCHW out, matching the PyTorch VGG_conv forward (training-mode BN)."""
    del b  # conv bias cancels exactly in training-mode BatchNorm centering.
    N, Cin, H, W = x_nchw.shape
    Cout = w_oihw.shape[0]
    K = 9 * Cin
    M = N * H * W

    tile_m = _round_up(min(tile_m, _round_up(M, 8)), 8)
    M_pad = _round_up(M, tile_m)
    C_pad = _round_up(Cout, 128)          # lane-dense output channels
    num_tiles = M_pad // tile_m

    # ---- wrapper glue: layout + im2col (all 3x3 tap shifts done once, outside the kernel) ----
    x_nhwc = jnp.transpose(x_nchw, (0, 2, 3, 1))
    x_p = jnp.pad(x_nhwc, ((0, 0), (1, 1), (1, 1), (0, 0)))
    taps = [x_p[:, kh:kh + H, kw:kw + W, :] for kh in range(3) for kw in range(3)]
    x_col = jnp.concatenate(taps, axis=-1).reshape(M, K)
    # Zero-padded rows contribute nothing to the stats (no conv bias), so padding M is safe.
    x_col = jnp.pad(x_col, ((0, M_pad - M), (0, 0))).astype(jnp.bfloat16)

    # (Cout, Cin, 3, 3) -> (kh, kw, Cin, Cout) -> (K, Cout), pad lanes to C_pad.
    w_mat = jnp.transpose(w_oihw, (2, 3, 1, 0)).reshape(K, Cout)
    w_mat = jnp.pad(w_mat, ((0, 0), (0, C_pad - Cout))).astype(jnp.bfloat16)

    cparams = pltpu.CompilerParams(
        dimension_semantics=("parallel",),
        vmem_limit_bytes=48 * 1024 * 1024)

    y, stats = pl.pallas_call(
        _conv_stats_kernel,
        out_shape=(jax.ShapeDtypeStruct((M_pad, C_pad), jnp.float32),
                   jax.ShapeDtypeStruct((num_tiles, 2, C_pad), jnp.float32)),
        grid=(num_tiles,),
        in_specs=[pl.BlockSpec((tile_m, K), lambda i: (i, 0)),
                  pl.BlockSpec((K, C_pad), lambda i: (0, 0))],
        out_specs=(pl.BlockSpec((tile_m, C_pad), lambda i: (i, 0)),
                   pl.BlockSpec((1, 2, C_pad), lambda i: (i, 0, 0))),
        compiler_params=cparams,
    )(x_col, w_mat)

    # ---- tiny (Cout,)-sized finalize: fold BN into one scale/shift vector per channel ----
    cnt = jnp.float32(M)
    sum_c = jnp.sum(stats[:, 0, :Cout], axis=0)
    sumsq_c = jnp.sum(stats[:, 1, :Cout], axis=0)
    mean = sum_c / cnt
    var = jnp.maximum(sumsq_c / cnt - mean * mean, 0.0)   # biased variance (PyTorch BN fwd)
    scale = gamma * jax.lax.rsqrt(var + eps)
    shift = beta - mean * scale
    scale_p = jnp.zeros((1, C_pad), jnp.float32).at[0, :Cout].set(scale)
    shift_p = jnp.zeros((1, C_pad), jnp.float32).at[0, :Cout].set(shift)

    out_pad = pl.pallas_call(
        _bn_relu_kernel,
        out_shape=jax.ShapeDtypeStruct((M_pad, C_pad), x_nchw.dtype),
        grid=(num_tiles,),
        in_specs=[pl.BlockSpec((tile_m, C_pad), lambda i: (i, 0)),
                  pl.BlockSpec((1, C_pad), lambda i: (0, 0)),
                  pl.BlockSpec((1, C_pad), lambda i: (0, 0))],
        out_specs=pl.BlockSpec((tile_m, C_pad), lambda i: (i, 0)),
        compiler_params=cparams,
    )(y, scale_p, shift_p)

    out = out_pad[:M, :Cout].reshape(N, H, W, Cout)
    return jnp.transpose(out, (0, 3, 1, 2))


def reference_forward(x, w, b, gamma, beta, eps=1e-5):
    """Pure-JAX reference reproducing the PyTorch forward (training-mode BN, with conv bias)."""
    y = jax.lax.conv_general_dilated(
        x, w, window_strides=(1, 1), padding=((1, 1), (1, 1)),
        dimension_numbers=("NCHW", "OIHW", "NCHW"))
    y = y + b.reshape(1, -1, 1, 1)
    mean = jnp.mean(y, axis=(0, 2, 3), keepdims=True)
    var = jnp.mean((y - mean) ** 2, axis=(0, 2, 3), keepdims=True)
    y = (y - mean) / jnp.sqrt(var + eps)
    y = y * gamma.reshape(1, -1, 1, 1) + beta.reshape(1, -1, 1, 1)
    return jnp.maximum(y, 0.0)


if __name__ == "__main__":
    # Small shapes consistent with VGG_conv(in_channel=4, out_channel=8)
    N, Cin, H, W = 2, 4, 16, 16
    Cout = 8

    key = jax.random.PRNGKey(0)
    kx, kw, kb, kg, kbe = jax.random.split(key, 5)

    x = jax.random.normal(kx, (N, Cin, H, W), dtype=jnp.float32)
    w = jax.random.normal(kw, (Cout, Cin, 3, 3), dtype=jnp.float32) * 0.1
    b = jax.random.normal(kb, (Cout,), dtype=jnp.float32) * 0.1
    gamma = 1.0 + 0.1 * jax.random.normal(kg, (Cout,), dtype=jnp.float32)
    beta = 0.1 * jax.random.normal(kbe, (Cout,), dtype=jnp.float32)

    # tile_m=128 so the toy problem (M = 2*16*16 = 512 rows) exercises a 4-step tiled grid.
    out = vgg_conv_forward(x, w, b, gamma, beta, tile_m=128)
    out = jax.block_until_ready(out)

    ref = reference_forward(x, w, b, gamma, beta)
    assert out.shape == (N, Cout, H, W)
    # bf16 MXU inputs (f32 accumulation) -> slightly looser tolerance than pure f32.
    err = float(jnp.max(jnp.abs(out - ref)))
    assert jnp.allclose(out, ref, rtol=2e-2, atol=2e-2), f"mismatch vs reference, max|err|={err}"

    print("KERNEL_OK")
</pallas_src>

<mosaic_0001>
module attributes {stable_mosaic.version = 11 : i64} {
  func.func @_conv_stats_kernel(%arg0: i32, %arg1: memref<128x36xbf16, #tpu.memory_space<vmem>>, %arg2: memref<36x128xbf16, #tpu.memory_space<vmem>>, %arg3: memref<128x128xf32, #tpu.memory_space<vmem>>, %arg4: memref<1x2x128xf32, #tpu.memory_space<vmem>>) attributes {dimension_semantics = [#tpu.dimension_semantics<parallel>], iteration_bounds = array<i64: 4>, scalar_prefetch = 0 : i64, scratch_operands = 0 : i64, tpu.core_type = #tpu.core_type<tc>, window_params = [{transform_indices = @transform_0, window_bounds = array<i64: 128, 36>}, {pipeline_mode = #tpu.pipeline_mode<synchronous>, transform_indices = @transform_1, window_bounds = array<i64: 36, 128>}, {transform_indices = @transform_2, window_bounds = array<i64: 128, 128>}, {transform_indices = @transform_3, window_bounds = array<i64: 1, 2, 128>}]} {
    %c0 = arith.constant 0 : index
    %c0_0 = arith.constant 0 : index
    %0 = vector.load %arg1[%c0, %c0_0] : memref<128x36xbf16, #tpu.memory_space<vmem>>, vector<128x36xbf16>
    %c0_1 = arith.constant 0 : index
    %c0_2 = arith.constant 0 : index
    %1 = vector.load %arg2[%c0_1, %c0_2] : memref<36x128xbf16, #tpu.memory_space<vmem>>, vector<36x128xbf16>
    %cst = arith.constant dense<0.000000e+00> : vector<128x128xf32>
    %2 = tpu.matmul %0, %1, %cst {dimension_numbers = #tpu.dot_dimension_numbers<[1], [0], [0], [1], [0, 0, 1, 1], [], []>} : vector<128x36xbf16>, vector<36x128xbf16>, vector<128x128xf32> -> vector<128x128xf32>
    %c0_3 = arith.constant 0 : index
    %c0_4 = arith.constant 0 : index
    %3 = vector.load %arg3[%c0_3, %c0_4] : memref<128x128xf32, #tpu.memory_space<vmem>>, vector<128x128xf32>
    tpu.vector_store %arg3[%c0_3, %c0_4], %2 {strides = array<i32>} : memref<128x128xf32, #tpu.memory_space<vmem>>, vector<128x128xf32>,
    %cst_5 = arith.constant dense<0.000000e+00> : vector<128xf32>
    %4 = vector.multi_reduction <add>, %2, %cst_5 [0] : vector<128x128xf32> to vector<128xf32>
    %5 = vector.shape_cast %4 : vector<128xf32> to vector<1x128xf32>
    %6 = arith.mulf %2, %2 : vector<128x128xf32>
    %cst_6 = arith.constant dense<0.000000e+00> : vector<128xf32>
    %7 = vector.multi_reduction <add>, %6, %cst_6 [0] : vector<128x128xf32> to vector<128xf32>
    %8 = vector.shape_cast %7 : vector<128xf32> to vector<1x128xf32>
    %9 = tpu.concatenate %5, %8 in 0 : vector<1x128xf32>, vector<1x128xf32> -> vector<2x128xf32>
    %10 = vector.shape_cast %9 : vector<2x128xf32> to vector<1x2x128xf32>
    %c0_7 = arith.constant 0 : index
    %c0_8 = arith.constant 0 : index
    %c0_9 = arith.constant 0 : index
    %11 = vector.load %arg4[%c0_7, %c0_8, %c0_9] : memref<1x2x128xf32, #tpu.memory_space<vmem>>, vector<1x2x128xf32>
    tpu.vector_store %arg4[%c0_7, %c0_8, %c0_9], %10 {strides = array<i32>} : memref<1x2x128xf32, #tpu.memory_space<vmem>>, vector<1x2x128xf32>,
    return
  }
  func.func @transform_0(%arg0: i32) -> (i32, i32) {
    %c0_i32 = arith.constant 0 : i32
    %c0_i32_0 = arith.constant 0 : i32
    return %arg0, %c0_i32 : i32, i32
  }
  func.func @transform_1(%arg0: i32) -> (i32, i32) {
    %c0_i32 = arith.constant 0 : i32
    %c0_i32_0 = arith.constant 0 : i32
    %c0_i32_1 = arith.constant 0 : i32
    return %c0_i32, %c0_i32_0 : i32, i32
  }
  func.func @transform_2(%arg0: i32) -> (i32, i32) {
    %c0_i32 = arith.constant 0 : i32
    %c0_i32_0 = arith.constant 0 : i32
    return %arg0, %c0_i32 : i32, i32
  }
  func.func @transform_3(%arg0: i32) -> (i32, i32, i32) {
    %c0_i32 = arith.constant 0 : i32
    %c0_i32_0 = arith.constant 0 : i32
    %c0_i32_1 = arith.constant 0 : i32
    return %arg0, %c0_i32, %c0_i32_0 : i32, i32, i32
  }
}

</mosaic_0001>

<bundles_post_ra>
// kernel: tpu_custom_call.1
= control target key start
LH: loop header
LB: loop body
LE: loop exit
PB: predicated region body
PF: predicated region fallthrough
CT: control target
= control target key end

     0   :  { %9 = vsyncpa [#allocation3], 0  ;;  %s1050_s0 = inlined_call_operand.vmem [shape: bf16[512,36], index: 0, kind: input, shape index: {}]   ;;  %s1051_s1 = inlined_call_operand.vmem [shape: bf16[36,128], index: 1, kind: input, shape index: {}]   ;;  %s1052_s2 = inlined_call_operand.hbm [shape: f32[512,128], index: 2, kind: output, shape index: {0}]   ;;  %s1053_s3 = inlined_call_operand.hbm [shape: f32[4,2,128], index: 3, kind: output, shape index: {1}]  }
   0x1   :  { %11 = vsyncpa [#allocation3 + $0x1], 0 }
   0x2   :  { %12 = vsyncpa [#allocation5], 0 }
   0x3   :  { %14 = vsyncpa [#allocation5 + $0x1], 0  ;;  %s842_s12 = smov 0   ;;  %s844_s13 = smov 0  }
   0x4   :  { %s846_s14 = smov 0   ;;  %s848_s15 = smov 0  }
   0x5 LB: > { %s863_s16 = sadd.s32 4294967295, %s816_s15   ;;  %s589_s17 = sadd.s32 4294967294, %s816_s15   ;;  %s816_s15 = sphi %s848_s15, %s1059_s15   ;;  %s812_s14 = sphi %s846_s14, %s1058_s14   ;;  %s808_s13 = sphi %s844_s13, %s1057_s13   ;;  %s804_s12 = sphi %s842_s12, %s1056_s12  }
   0x6   : > { %s867_s18 = sadd.s32 1, %s816_s15   ;;  %s74_s19 = sadd.s32 1, %s812_s14 }
   0x7   : > { %s71_s20 = ssub.s32 %s816_s15, %s867_s18  ;;  %p84_p0 = scmp.ne.s32.totalorder %s812_s14, %s808_s13 }
   0x8   : > { %p72_p1 = scmp.eq.s32.totalorder %s71_s20, 0  ;;  %p85_p2 = scmp.eq.s32.totalorder %s863_s16, 3 }
   0x9   : > { %p90_p3 = scmp.ne.s32.totalorder %s808_s13, %s804_s12  ;;  %p91_p4 = scmp.eq.s32.totalorder %s589_s17, 3 }
   0xa   : > { %s878_s21 = scalar_select %p72_p1, %s812_s14, %s74_s19  }
   0xb   : > { %p880_p5 = por %p85_p2, %p84_p0  ;;  %p884_p6 = por %p91_p4, %p90_p3 }
   0xc   : > { %p592_p7 = scmp.ge.s32.totalorder %s816_s15, 1  ;;  %p147_p8 = scmp.lt.s32.totalorder %s816_s15, 5 }
   0xe   : > { %p148_p9 = pnand %p592_p7, %p147_p8 }
   0xf   : > { %v711_v0 = vld [vmem:[%s1051_s1] sm:$0xff] (!%p148_p9)   ;;  %v712_v1 = vld [vmem:[%s1051_s1 + $0x8] sm:$0xff] (!%p148_p9)   ;;  %s595_s28 = sshll.u32 (!%p148_p9), %s863_s16, 4  ;;  %v713_v2 = vld [vmem:[%s1051_s1 + $0x10] ss:$0 sps:$4 sm:$0x33] (!%p148_p9)  }
  0x10   : > { %151 = sbr.rel (%p148_p9) target bundleno = 313 (0x139), region = 28  ;;  %635 = vmatprep.subr.bf16.mxu0 (!%p148_p9), %v711_v0  ;;  %p177_p10 = scmp.lt.s32.totalorder (!%p148_p9), %s595_s28, 63  ;;  %657 = vmatprep.subr.bf16.mxu1 (!%p148_p9), %v711_v0  ;;  %vm285_vm0 = vcmask (!%p148_p9), 1041408   ;;  %vm260_vm1 = vcmask (!%p148_p9), 293888  }
  0x11   : > { %636 = vmatpush3.bf16.msra.mxu0 (!%p148_p9), %v711_v0  ;;  %660 = vmatpush3.bf16.msra.mxu1 (!%p148_p9), %v711_v0  ;;  %v287_v3 = vsel (!%p148_p9), %vm285_vm0, %v713_v2, 0  ;;  %s912_s8 = sand.u32 (!%p148_p9), 1, %s808_s13   ;;  %s623_s11 = sshll.u32 (!%p148_p9), %s863_s16, 11 }
  0x12   : > { %637 = vmatprep.subr.bf16.mxu0 (!%p148_p9), %v712_v1  ;;  %658 = vmatprep.subr.bf16.mxu1 (!%p148_p9), %v712_v1  ;;  %s593_s9 = sshll.u32 (!%p148_p9), %s912_s8, 7  ;;  %s948_s24 = scalar_lea.hbm (!%p148_p9), %s1052_s2, %s623_s11 }
  0x13   : > { %s915_s10 = scalar_lea.vmem (!%p148_p9), [#allocation2], %s593_s9  ;;  %s464_s25 = scalar_lea.sflag (!%p148_p9), [#allocation3], %s912_s8 }
  0x14   : > { %s482_s17 = sshll.u32 (!%p148_p9), %s915_s10, 4  ;;  %s818_s27 = smov (!%p148_p9), [#allocation2]   ;;  %s950_s17 = int_to_ptr.vmem [resolvable:$true] %s482_s17 }
  0x15   : > { %638 = vmatpush3.bf16.msra.mxu0 (!%p148_p9), %v712_v1  ;;  %661 = vmatpush3.bf16.msra.mxu1 (!%p148_p9), %v712_v1  ;;  %s722_s26 = scalar_lea.vmem (!%p148_p9), %s950_s17, 2048 }
  0x16   : > { %663 = vmatprep.subr.msk.bf16.mxu0 (!%p148_p9), %vm285_vm0, %v713_v2  ;;  %664 = vmatprep.subr.msk.bf16.mxu1 (!%p148_p9), %vm285_vm0, %v713_v2  ;;  %p723_p11 = scmp.ne.s32.totalorder (!%p148_p9), %s950_s17, %s722_s26 }
  0x17   : > { %s1061_s28 = smov (!%p177_p10, %s595_s28), 63 }
  0x18   : > { %s596_s4 = sshll.u32 %s1061_s28, 2  ;;  %p724_p12 = pnand %p723_p11, %p880_p5 }
  0x19   : > { %s180_s7 = scalar_lea.vmem %s1050_s0, %s596_s4  ;;  %640 = vmatpush3.bf16.msra.mxu0 %v287_v3  ;;  %662 = vmatpush3.bf16.msra.mxu1 %v287_v3  ;;  %s726_s28 = sshll.u32 %s818_s27, 4  ;;  %s727_s28 = int_to_ptr.vmem [resolvable:$false] %s726_s28 }
  0x1a   : > { %v714_v4 = vld [vmem:[%s180_s7] sm:$0xff]   ;;  %v715_v5 = vld [vmem:[%s180_s7 + $0x8] sm:$0xff]   ;;  %v716_v6 = vld [vmem:[%s180_s7 + $0x10] sm:$0xff]   ;;  %p725_p13 = pneg %p724_p12  ;;  %s728_s29 = scalar_lea.vmem %s727_s28, 4096 }
  0x1b   : > { %641 = vmatprep.mubr.msk.bf16.mxu0 %vm260_vm1, %v714_v4  ;;  %v718_v7 = vld [vmem:[%s180_s7 + $0x20] sm:$0xff]   ;;  %v719_v8 = vld [vmem:[%s180_s7 + $0x28] sm:$0xff]   ;;  %v720_v9 = vld [vmem:[%s180_s7 + $0x30] sm:$0xff]   ;;  %p729_p0 = scmp.lt.s32.totalorder %s950_s17, %s727_s28  ;;  %p730_p1 = scmp.lt.s32.totalorder %s728_s29, %s722_s26 }
  0x1c   : > { %642 = vmatmul.mubr.msk.bf16.vlgmr.msra.gmra.mrb[0].mxu0 %vm260_vm1, %v715_v5  ;;  %649 = vmatprep.mubr.msk.bf16.mxu1 %vm260_vm1, %v718_v7  ;;  %v717_v10 = vld [vmem:[%s180_s7 + $0x18] sm:$0xff]  }
  0x1d   : > { %645 = vmatprep.mubr.msk.bf16.mxu0 %vm260_vm1, %v716_v6  ;;  %650 = vmatmul.mubr.msk.bf16.vlgmr.msra.gmra.mrb[0].mxu1 %vm260_vm1, %v719_v8  ;;  %v721_v11 = vld [vmem:[%s180_s7 + $0x38] sm:$0xff]   ;;  %p731_p2 = por %p730_p1, %p729_p0 }
  0x1e   : > { %653 = vmatprep.mubr.msk.bf16.mxu1 %vm260_vm1, %v720_v9 }
  0x1f   : > { %p732_p3 = pnand %p731_p2, %p725_p13 }
  0x24   : > { %646 = vmatmul.mubr.msk.bf16.gmra.mrb[4].mxu0 %vm260_vm1, %v717_v10 }
  0x25   : > { %654 = vmatmul.mubr.msk.bf16.gmra.mrb[4].mxu1 %vm260_vm1, %v721_v11 }
  0xef   : > { %v643_v12 = vpop.f32.mrb[0].mxu0 }
  0xf0   : > { %388 = vst [vmem:[%s915_s10 + $0x10] sm:$0xff] %v643_v12  ;;  %v323_v13 = vpop.f32.mrb[1].mxu0  ;;  %v918_v14 = vpop.f32.mrb[0].mxu1  ;;  %v425_v23 = vmul.f32 %v643_v12, %v643_v12 }
  0xf1   : > { %386 = vst [vmem:[%s915_s10] sm:$0xff] %v323_v13  ;;  %v644_v15 = vpop.f32.mrb[2].mxu0  ;;  %396 = vst [vmem:[%s915_s10 + $0x50] sm:$0xff] %v918_v14  ;;  %v923_v16 = vpop.f32.mrb[1].mxu1  ;;  %v423_v19 = vmul.f32 %v323_v13, %v323_v13 }
  0xf2   : > { %389 = vst [vmem:[%s915_s10 + $0x18] sm:$0xff] %v644_v15  ;;  %v326_v17 = vpop.f32.mrb[3].mxu0  ;;  %394 = vst [vmem:[%s915_s10 + $0x40] sm:$0xff] %v923_v16  ;;  %v928_v18 = vpop.f32.mrb[2].mxu1  ;;  %v426_v26 = vmul.f32 %v644_v15, %v644_v15 }
  0xf3   : > { %387 = vst [vmem:[%s915_s10 + $0x8] sm:$0xff] %v326_v17  ;;  %v402_v20 = vadd.f32 %v326_v17, %v323_v13  ;;  %v424_v21 = vmul.f32 %v326_v17, %v326_v17  ;;  %397 = vst [vmem:[%s915_s10 + $0x58] sm:$0xff] %v928_v18  ;;  %v933_v22 = vpop.f32.mrb[3].mxu1 }
  0xf4   : > { %395 = vst [vmem:[%s915_s10 + $0x48] sm:$0xff] %v933_v22 }
  0xf5   : > { %v403_v24 = vadd.f32 %v643_v12, %v402_v20  ;;  %v439_v25 = vadd.f32 %v424_v21, %v423_v19 }
  0xf7   : > { %v440_v27 = vadd.f32 %v439_v25, %v425_v23  ;;  %v647_v28 = vpop.f32.mrb[4].mxu0  ;;  %v404_v29 = vadd.f32 %v644_v15, %v403_v24 }
  0xf8   : > { %392 = vst [vmem:[%s915_s10 + $0x30] sm:$0xff] %v647_v28  ;;  %v339_v30 = vpop.f32.mrb[5].mxu0  ;;  %v940_v31 = vpop.f32.mrb[4].mxu1  ;;  %v429_v43 = vmul.f32 %v647_v28, %v647_v28 }
  0xf9   : > { %390 = vst [vmem:[%s915_s10 + $0x20] sm:$0xff] %v339_v30  ;;  %v405_v32 = vadd.f32 %v404_v29, %v339_v30  ;;  %v427_v33 = vmul.f32 %v339_v30, %v339_v30  ;;  %v441_v34 = vadd.f32 %v440_v27, %v426_v26  ;;  %v648_v35 = vpop.f32.mrb[6].mxu0  ;;  %400 = vst [vmem:[%s915_s10 + $0x70] sm:$0xff] %v940_v31  ;;  %v371_v36 = vpop.f32.mrb[5].mxu1 }
  0xfa   : > { %393 = vst [vmem:[%s915_s10 + $0x38] sm:$0xff] %v648_v35  ;;  %v342_v37 = vpop.f32.mrb[7].mxu0  ;;  %398 = vst [vmem:[%s915_s10 + $0x60] sm:$0xff] %v371_v36  ;;  %v954_v38 = vpop.f32.mrb[6].mxu1 }
  0xfb   : > { %v442_v39 = vadd.f32 %v441_v34, %v427_v33  ;;  %391 = vst [vmem:[%s915_s10 + $0x28] sm:$0xff] %v342_v37  ;;  %v406_v40 = vadd.f32 %v405_v32, %v342_v37  ;;  %v428_v41 = vmul.f32 %v342_v37, %v342_v37  ;;  %401 = vst [vmem:[%s915_s10 + $0x78] sm:$0xff] %v954_v38  ;;  %v374_v42 = vpop.f32.mrb[7].mxu1 }
  0xfc   : > { %399 = vst [vmem:[%s915_s10 + $0x68] sm:$0xff] %v374_v42 }
  0xfd   : > { %v407_v44 = vadd.f32 %v647_v28, %v406_v40  ;;  %v443_v45 = vadd.f32 %v442_v39, %v428_v41 }
  0xfe   : > { %735 = shalt.err (!%p732_p3)
}
  0xff   : > { %s736_s30 = scalar_lea.hbm %s948_s24, 2048  ;;  %s740_s6 = scalar_lea.hbm %s1052_s2, 8192 }
 0x100   : > { %p737_p4 = scmp.ne.s32.totalorder %s948_s24, %s736_s30  ;;  %p741_p9 = scmp.lt.u32.totalorder %s948_s24, %s1052_s2 }
 0x101   : > { %p742_p10 = scmp.lt.u32.totalorder %s740_s6, %s736_s30  ;;  %p744_p12 = scmp.lt.u32.totalorder %s736_s30, %s948_s24 }
 0x102   : > { %p738_p7 = pnand %p737_p4, %p880_p5 }
 0x103   : > { %p743_p11 = por %p742_p10, %p741_p9 }
 0x104   : > { %p739_p8 = pneg %p738_p7 }
 0x105   : > { %p745_p13 = por %p744_p12, %p743_p11 }
 0x107   : > { %p746_p0 = pnand %p745_p13, %p739_p8 }
 0x109   : > { %749 = shalt.err (!%p746_p0)
}
 0x10a   : > { %s819_s10 = smov 128   ;;  %s820_s11 = smov 8   ;;  %v430_v46 = vmul.f32 %v648_v35, %v648_v35  ;;  %v444_v47 = vadd.f32 %v443_v45, %v429_v43  ;;  %v408_v48 = vadd.f32 %v648_v35, %v407_v44  ;;  %v431_v49 = vmul.f32 %v923_v16, %v923_v16 }
 0x10b   : > { %665 = dma.vmem_to_hbm [thread:$0]  (%p880_p5), %s950_s17, 2048, %s948_s24, %s464_s25, %s819_s10, %s819_s10, %s820_s11   ;;  %v432_v54 = vmul.f32 %v933_v22, %v933_v22  ;;  %v433_v55 = vmul.f32 %v918_v14, %v918_v14  ;;  %v434_v58 = vmul.f32 %v928_v18, %v928_v18  ;;  %v435_v61 = vmul.f32 %v371_v36, %v371_v36 }
 0x10c   : > { %v409_v50 = vadd.f32 %v408_v48, %v923_v16  ;;  %v445_v51 = vadd.f32 %v444_v47, %v430_v46  ;;  %v436_v2 = vmul.f32 %v374_v42, %v374_v42  ;;  %v437_v3 = vmul.f32 %v940_v31, %v940_v31  ;;  %s594_s17 = sshll.u32 %s912_s8, 1  ;;  %s620_s19 = sshll.u32 %s863_s16, 5 }
 0x10d   : > { %v438_v6 = vmul.f32 %v954_v38, %v954_v38  ;;  %s175_s20 = scalar_lea.vmem [#allocation4], %s594_s17  ;;  %vm460_vm2 = vcmask 1040384   ;;  %s1007_s27 = scalar_lea.hbm %s1053_s3, %s620_s19 }
 0x10e   : > { %v446_v52 = vadd.f32 %v445_v51, %v431_v49  ;;  %v410_v53 = vadd.f32 %v409_v50, %v933_v22  ;;  %s498_s24 = sshll.u32 %s175_s20, 4  ;;  %s469_s28 = scalar_lea.sflag [#allocation5], %s912_s8  ;;  %s1009_s24 = int_to_ptr.vmem [resolvable:$true] %s498_s24 }
 0x10f   : > { %s750_s29 = scalar_lea.vmem %s1009_s24, 32  ;;  %s821_s16 = smov [#allocation4]  }
 0x110   : > { %v411_v56 = vadd.f32 %v918_v14, %v410_v53  ;;  %v447_v57 = vadd.f32 %v446_v52, %v432_v54  ;;  %p751_p1 = scmp.ne.s32.totalorder %s1009_s24, %s750_s29  ;;  %s754_s30 = sshll.u32 %s821_s16, 4  ;;  %s755_s30 = int_to_ptr.vmem [resolvable:$false] %s754_s30 }
 0x111   : > { %s756_s4 = scalar_lea.vmem %s755_s30, 64  ;;  %p757_p4 = scmp.lt.s32.totalorder %s1009_s24, %s755_s30 }
 0x112   : > { %v448_v59 = vadd.f32 %v447_v57, %v433_v55  ;;  %v412_v60 = vadd.f32 %v928_v18, %v411_v56  ;;  %p752_p2 = pnand %p751_p1, %p880_p5  ;;  %p758_p7 = scmp.lt.s32.totalorder %s756_s4, %s750_s29 }
 0x114   : > { %v413_v62 = vadd.f32 %v412_v60, %v371_v36  ;;  %v449_v63 = vadd.f32 %v448_v59, %v434_v58  ;;  %p753_p3 = pneg %p752_p2  ;;  %p759_p8 = por %p758_p7, %p757_p4 }
 0x116   : > { %v450_v0 = vadd.f32 %v449_v63, %v435_v61  ;;  %v414_v1 = vadd.f32 %v413_v62, %v374_v42  ;;  %p760_p9 = pnand %p759_p8, %p753_p3 }
 0x118   : > { %v415_v4 = vadd.f32 %v940_v31, %v414_v1  ;;  %v451_v5 = vadd.f32 %v450_v0, %v436_v2 }
 0x11a   : > { %v416_v7 = vadd.f32 %v954_v38, %v415_v4  ;;  %v452_v8 = vadd.f32 %v451_v5, %v437_v3 }
 0x11c   : > { %v417_v9 = vrot.slane %v416_v7, 4  ;;  %v453_v10 = vadd.f32 %v452_v8, %v438_v6 }
 0x11e   : > { %v418_v11 = vadd.f32 %v417_v9, %v416_v7  ;;  %v454_v12 = vrot.slane %v453_v10, 4 }
 0x120   : > { %v419_v13 = vrot.slane %v418_v11, 2  ;;  %v455_v14 = vadd.f32 %v454_v12, %v453_v10 }
 0x122   : > { %v420_v15 = vadd.f32 %v419_v13, %v418_v11  ;;  %v456_v16 = vrot.slane %v455_v14, 2 }
 0x124   : > { %v421_v17 = vrot.slane %v420_v15, 1  ;;  %v457_v18 = vadd.f32 %v456_v16, %v455_v14 }
 0x126   : > { %v458_v19 = vrot.slane %v457_v18, 1  ;;  %v422_v20 = vadd.f32 %v421_v17, %v420_v15 }
 0x128   : > { %v459_v21 = vadd.f32 %v458_v19, %v457_v18 }
 0x12a   : > { %v461_v22 = vsel %vm460_vm2, %v422_v20, %v459_v21 }
 0x12b   : > { %462 = vst [vmem:[%s175_s20] sm:$0x3] %v461_v22 }
 0x12c   : > { %763 = shalt.err (!%p760_p9)
}
 0x12d   : > { %s764_s8 = scalar_lea.hbm %s1007_s27, 32  ;;  %s768_s7 = scalar_lea.hbm %s1053_s3, 128 }
 0x12e   : > { %p765_p10 = scmp.ne.s32.totalorder %s1007_s27, %s764_s8  ;;  %p769_p13 = scmp.lt.u32.totalorder %s1007_s27, %s1053_s3 }
 0x12f   : > { %p770_p0 = scmp.lt.u32.totalorder %s768_s7, %s764_s8  ;;  %p772_p2 = scmp.lt.u32.totalorder %s764_s8, %s1007_s27 }
 0x130   : > { %p766_p11 = pnand %p765_p10, %p880_p5 }
 0x131   : > { %p771_p1 = por %p770_p0, %p769_p13 }
 0x132   : > { %p767_p12 = pneg %p766_p11 }
 0x133   : > { %p773_p3 = por %p772_p2, %p771_p1 }
 0x135   : > { %p774_p4 = pnand %p773_p3, %p767_p12 }
 0x137   : > { %777 = shalt.err (!%p774_p4)
}
 0x138   : > { %666 = dma.vmem_to_hbm [thread:$0]  (%p880_p5), %s1009_s24, 32, %s1007_s27, %s469_s28  }
 0x139 PF: > { %p676_p7 = scmp.ge.s32.totalorder %s816_s15, 2  ;;  %s510_s11 = sand.u32 1, %s804_s12  }
 0x13a   : > { %s511_s17 = scalar_lea.sflag [#allocation3], %s510_s11 }
 0x13b   : > { %p670_p8 = pnand %p676_p7, %p884_p6 }
 0x13d   : > { %795 = dma.done.wait (!%p670_p8), %s511_s17, 2048  }
 0x13e   : > { %797 = vsyncadd (!%p670_p8), %s511_s17, 4294965248  ;;  %s520_s19 = scalar_lea.sflag [#allocation5], %s510_s11 }
 0x13f   : > { %799 = dma.done.wait (!%p670_p8), %s520_s19, 32  }
 0x140   : > { %801 = vsyncadd (!%p670_p8), %s520_s19, 4294967264  ;;  %p17_p5 = scmp.ge.s32.totalorder %s867_s18, 6   ;;  %s1056_s12 = smov %s808_s13 }
 0x141   : > { %s1057_s13 = smov %s812_s14  ;;  %s1058_s14 = smov %s878_s21 }
 0x142   : > { %s1059_s15 = smov %s867_s18  ;;  %19 = sbr.rel (!%p17_p5) target bundleno = 5 (0x5), region = 80 }
 0x149   :  { %525 = vsyncpa [#allocation3], 1 }
 0x14a   :  { %527 = vsyncpa [#allocation3 + $0x1], 1 }
 0x14b   :  { %528 = vsyncpa [#allocation5], 1 }
 0x14c   :  { %530 = vsyncpa [#allocation5 + $0x1], 1 }

</bundles_post_ra>
